<compile_context>
chip_gen: v7x
topology: tpu7x:2x2x1
jax: 0.10.0
libtpu: 0.0.40
codegen_flags: <defaults>
</compile_context>

<pallas_src>
import jax
import jax.numpy as jnp
from jax.experimental import pallas as pl
from jax.experimental.pallas import tpu as pltpu

BN_EPS = 1e-5


def gating_context_kernel(xb_ref, xc_ref, w_ref, gamma_ref, beta_ref, o_ref):
    # xb_ref:    (B, D)   bf16  -- resident across the whole grid (MXU operand)
    # xc_ref:    (B, tn)  f32   -- column stripe of x (for the gating multiply)
    # w_ref:     (D, tn)  bf16  -- column stripe of the gating weights
    # gamma_ref: (1, tn)  f32
    # beta_ref:  (1, tn)  f32
    # o_ref:     (B, tn)  f32
    #
    # gates = x @ W[:, cols] on the MXU: bf16 operands, f32 accumulation.
    gates = jnp.dot(xb_ref[...], w_ref[...],
                    preferred_element_type=jnp.float32)          # (B, tn) f32

    # BatchNorm1d (training semantics): per-feature batch mean / biased var.
    # Single pass: var = E[g^2] - mean^2, clamped at 0.  Affine folded into a
    # per-feature scale/shift so the (B, tn) tile only sees one mul + one add.
    inv_b = 1.0 / gates.shape[0]
    mean = jnp.sum(gates, axis=0, keepdims=True) * inv_b          # (1, tn)
    mean_sq = jnp.sum(gates * gates, axis=0, keepdims=True) * inv_b
    var = jnp.maximum(mean_sq - mean * mean, 0.0)

    scale = gamma_ref[...] * jax.lax.rsqrt(var + BN_EPS)          # (1, tn)
    shift = beta_ref[...] - mean * scale                          # (1, tn)

    # Sigmoid gate (EUP) + elementwise gating multiply (VPU).
    gates = jax.nn.sigmoid(gates * scale + shift)
    o_ref[...] = (xc_ref[...] * gates).astype(o_ref.dtype)


def _vmem_limit_bytes():
    """Generation-aware VMEM limit: ~5/8 of per-core capacity, capped at 64 MiB.

    v7x (64 MiB/TC) -> ~40 MiB; v5e/v6e (128 MiB) -> 64 MiB.  Falls back to the
    smallest (v7x) capacity if the device cannot be queried at trace time."""
    try:
        cap = int(pltpu.get_tpu_info().vmem_capacity_bytes)
    except Exception:
        cap = 64 * 1024 * 1024
    return max(32 * 1024 * 1024, min(cap * 5 // 8, 64 * 1024 * 1024))


def _pick_tile_n(B, D, budget_bytes):
    """Largest lane-aligned column tile whose working set fits the VMEM budget.

    Keeps the grid length >= 2 whenever D allows it (both v7x TensorCores get
    stripes) and prefers widths that are multiples of 256 (v6e/v7x MXU)."""
    resident = 2 * B * D * 2          # resident bf16 x; conservatively counted
                                      # double-buffered (constant index_map =>
                                      # never re-fetched from HBM).
    for cand in (2048, 1536, 1024, 768, 512, 384, 256, 128):
        if cand > D or D % cand != 0 or cand % 128 != 0:
            continue
        if D > 128 and cand * 2 > D:  # keep >= 2 stripes for megacore sharding
            continue
        need = (
            resident
            + 2 * D * cand * 2        # double-buffered bf16 W stripe
            + 2 * B * cand * 4        # double-buffered f32 x column stripe
            + 2 * B * cand * 4        # double-buffered output stripe
            + 4 * cand * 4            # gamma / beta stripes
        )
        if need <= budget_bytes:
            return cand
    raise ValueError(
        "GatingContext: resident x + minimum (tn=128) stripes exceed the VMEM "
        "budget; a batch-tiled two-pass variant is required for this shape."
    )


def gating_context(x, w, gamma, beta, *, tn=None):
    B, D = x.shape
    assert w.shape == (D, D)
    assert D % 128 == 0, "dim must be a multiple of 128"

    vmem_limit = _vmem_limit_bytes()
    if tn is None:
        tn = _pick_tile_n(B, D, budget_bytes=int(vmem_limit * 0.8))
    assert D % tn == 0 and tn % 128 == 0, "tile must be a lane-aligned divisor"

    x_bf16 = x.astype(jnp.bfloat16)            # cast ONCE, not per grid step
    w_bf16 = w.astype(jnp.bfloat16)            # halve HBM traffic on W
    gamma2d = gamma.reshape(1, D).astype(jnp.float32)
    beta2d = beta.reshape(1, D).astype(jnp.float32)

    cost = pl.CostEstimate(
        flops=2 * B * D * D,
        transcendentals=2 * B * D,             # sigmoid ~ exp + reciprocal
        bytes_accessed=(B * D * 2              # bf16 x (resident, read once)
                        + B * D * 4            # f32 x column stripes
                        + D * D * 2            # bf16 W
                        + 2 * D * 4            # gamma / beta
                        + B * D * 4),          # output
    )

    return pl.pallas_call(
        gating_context_kernel,
        out_shape=jax.ShapeDtypeStruct((B, D), x.dtype),
        grid=(D // tn,),
        in_specs=[
            pl.BlockSpec((B, D), lambda j: (0, 0)),    # bf16 x: fully resident
            pl.BlockSpec((B, tn), lambda j: (0, j)),   # f32 x column stripe
            pl.BlockSpec((D, tn), lambda j: (0, j)),   # W column stripe
            pl.BlockSpec((1, tn), lambda j: (0, j)),   # gamma stripe
            pl.BlockSpec((1, tn), lambda j: (0, j)),   # beta stripe
        ],
        out_specs=pl.BlockSpec((B, tn), lambda j: (0, j)),
        compiler_params=pltpu.CompilerParams(
            dimension_semantics=("parallel",),         # shard stripes over TCs
            vmem_limit_bytes=vmem_limit,
        ),
        cost_estimate=cost,
    )(x_bf16, x, w_bf16, gamma2d, beta2d)


def reference_f32(x, w, gamma, beta):
    gates = x @ w
    mean = jnp.mean(gates, axis=0, keepdims=True)
    var = jnp.mean((gates - mean) ** 2, axis=0, keepdims=True)
    gates = (gates - mean) / jnp.sqrt(var + BN_EPS)
    gates = gates * gamma[None, :] + beta[None, :]
    return x * jax.nn.sigmoid(gates)


def reference_matched(x, w, gamma, beta):
    # Same numerics as the kernel (bf16 matmul operands, f32 accum + f32 BN).
    gates = jnp.dot(
        x.astype(jnp.bfloat16), w.astype(jnp.bfloat16),
        preferred_element_type=jnp.float32,
    )
    inv_b = 1.0 / gates.shape[0]
    mean = jnp.sum(gates, axis=0, keepdims=True) * inv_b
    mean_sq = jnp.sum(gates * gates, axis=0, keepdims=True) * inv_b
    var = jnp.maximum(mean_sq - mean * mean, 0.0)
    scale = gamma[None, :] * jax.lax.rsqrt(var + BN_EPS)
    shift = beta[None, :] - mean * scale
    return x * jax.nn.sigmoid(gates * scale + shift)


if __name__ == "__main__":
    key = jax.random.PRNGKey(0)
    B, D = 8, 256  # small test: batch 8, dim 256 -> 2 column tiles at tn=128

    kx, kw = jax.random.split(key)
    x = jax.random.normal(kx, (B, D), dtype=jnp.float32)
    # gating_weights ~ randn(dim, dim) / sqrt(dim)
    w = jax.random.normal(kw, (D, D), dtype=jnp.float32) / jnp.sqrt(float(D))
    # BatchNorm1d default init: gamma=1, beta=0
    gamma = jnp.ones((D,), dtype=jnp.float32)
    beta = jnp.zeros((D,), dtype=jnp.float32)

    # Explicit tn=128 exercises the multi-tile (grid=(2,)) path.
    out_tiled = gating_context(x, w, gamma, beta, tn=128)
    # Default tile-selection path (also yields tn=128 / grid=(2,) at D=256).
    out_auto = gating_context(x, w, gamma, beta)
    jax.block_until_ready(out_tiled)
    jax.block_until_ready(out_auto)

    ref_match = reference_matched(x, w, gamma, beta)
    ref_f32 = reference_f32(x, w, gamma, beta)

    # Tight check vs numerics-matched reference (kernel logic correctness).
    assert jnp.allclose(out_tiled, ref_match, atol=2e-3, rtol=2e-3), \
        "tiled kernel mismatch vs matched reference"
    assert jnp.allclose(out_auto, ref_match, atol=2e-3, rtol=2e-3), \
        "auto-tile kernel mismatch vs matched reference"
    # Looser check vs pure-f32 reference (bf16 matmul tolerance).
    assert jnp.allclose(out_tiled, ref_f32, atol=5e-2, rtol=5e-2), \
        "kernel mismatch vs f32 reference"

    print("KERNEL_OK")
</pallas_src>

<mosaic_0001>
module attributes {stable_mosaic.version = 11 : i64} {
  func.func @gating_context_kernel(%arg0: i32, %arg1: memref<8x256xbf16, #tpu.memory_space<vmem>>, %arg2: memref<8x128xf32, #tpu.memory_space<vmem>>, %arg3: memref<256x128xbf16, #tpu.memory_space<vmem>>, %arg4: memref<1x128xf32, #tpu.memory_space<vmem>>, %arg5: memref<1x128xf32, #tpu.memory_space<vmem>>, %arg6: memref<8x128xf32, #tpu.memory_space<vmem>>) attributes {dimension_semantics = [#tpu.dimension_semantics<parallel>], iteration_bounds = array<i64: 2>, scalar_prefetch = 0 : i64, scratch_operands = 0 : i64, tpu.core_type = #tpu.core_type<tc>, window_params = [{pipeline_mode = #tpu.pipeline_mode<synchronous>, transform_indices = @transform_0, window_bounds = array<i64: 8, 256>}, {transform_indices = @transform_1, window_bounds = array<i64: 8, 128>}, {transform_indices = @transform_2, window_bounds = array<i64: 256, 128>}, {transform_indices = @transform_3, window_bounds = array<i64: 1, 128>}, {transform_indices = @transform_4, window_bounds = array<i64: 1, 128>}, {transform_indices = @transform_5, window_bounds = array<i64: 8, 128>}]} {
    %c0 = arith.constant 0 : index
    %c0_0 = arith.constant 0 : index
    %0 = vector.load %arg1[%c0, %c0_0] : memref<8x256xbf16, #tpu.memory_space<vmem>>, vector<8x256xbf16>
    %c0_1 = arith.constant 0 : index
    %c0_2 = arith.constant 0 : index
    %1 = vector.load %arg3[%c0_1, %c0_2] : memref<256x128xbf16, #tpu.memory_space<vmem>>, vector<256x128xbf16>
    %cst = arith.constant dense<0.000000e+00> : vector<8x128xf32>
    %2 = tpu.matmul %0, %1, %cst {dimension_numbers = #tpu.dot_dimension_numbers<[1], [0], [0], [1], [0, 0, 1, 1], [], []>} : vector<8x256xbf16>, vector<256x128xbf16>, vector<8x128xf32> -> vector<8x128xf32>
    %cst_3 = arith.constant dense<0.000000e+00> : vector<128xf32>
    %3 = vector.multi_reduction <add>, %2, %cst_3 [0] : vector<8x128xf32> to vector<128xf32>
    %4 = vector.shape_cast %3 : vector<128xf32> to vector<1x128xf32>
    %cst_4 = arith.constant 1.250000e-01 : f32
    %5 = vector.broadcast %cst_4 : f32 to vector<1x128xf32>
    %6 = arith.mulf %4, %5 : vector<1x128xf32>
    %7 = arith.mulf %2, %2 : vector<8x128xf32>
    %cst_5 = arith.constant dense<0.000000e+00> : vector<128xf32>
    %8 = vector.multi_reduction <add>, %7, %cst_5 [0] : vector<8x128xf32> to vector<128xf32>
    %9 = vector.shape_cast %8 : vector<128xf32> to vector<1x128xf32>
    %cst_6 = arith.constant 1.250000e-01 : f32
    %10 = vector.broadcast %cst_6 : f32 to vector<1x128xf32>
    %11 = arith.mulf %9, %10 : vector<1x128xf32>
    %12 = arith.mulf %6, %6 : vector<1x128xf32>
    %13 = arith.subf %11, %12 : vector<1x128xf32>
    %cst_7 = arith.constant 0.000000e+00 : f32
    %14 = vector.broadcast %cst_7 : f32 to vector<1x128xf32>
    %15 = arith.maximumf %13, %14 : vector<1x128xf32>
    %c0_8 = arith.constant 0 : index
    %c0_9 = arith.constant 0 : index
    %16 = vector.load %arg4[%c0_8, %c0_9] : memref<1x128xf32, #tpu.memory_space<vmem>>, vector<1x128xf32>
    %cst_10 = arith.constant 9.99999974E-6 : f32
    %17 = vector.broadcast %cst_10 : f32 to vector<1x128xf32>
    %18 = arith.addf %15, %17 : vector<1x128xf32>
    %19 = math.rsqrt %18 : vector<1x128xf32>
    %20 = arith.mulf %16, %19 : vector<1x128xf32>
    %c0_11 = arith.constant 0 : index
    %c0_12 = arith.constant 0 : index
    %21 = vector.load %arg5[%c0_11, %c0_12] : memref<1x128xf32, #tpu.memory_space<vmem>>, vector<1x128xf32>
    %22 = arith.mulf %6, %20 : vector<1x128xf32>
    %23 = arith.subf %21, %22 : vector<1x128xf32>
    %24 = vector.broadcast %20 : vector<1x128xf32> to vector<8x128xf32>
    %25 = arith.mulf %2, %24 : vector<8x128xf32>
    %26 = vector.broadcast %23 : vector<1x128xf32> to vector<8x128xf32>
    %27 = arith.addf %25, %26 : vector<8x128xf32>
    %28 = arith.negf %27 : vector<8x128xf32>
    %29 = math.exp %28 : vector<8x128xf32>
    %cst_13 = arith.constant 1.000000e+00 : f32
    %30 = vector.broadcast %cst_13 : f32 to vector<8x128xf32>
    %31 = arith.addf %30, %29 : vector<8x128xf32>
    %32 = arith.divf %30, %31 : vector<8x128xf32>
    %c0_14 = arith.constant 0 : index
    %c0_15 = arith.constant 0 : index
    %33 = vector.load %arg2[%c0_14, %c0_15] : memref<8x128xf32, #tpu.memory_space<vmem>>, vector<8x128xf32>
    %34 = arith.mulf %33, %32 : vector<8x128xf32>
    %c0_16 = arith.constant 0 : index
    %c0_17 = arith.constant 0 : index
    %35 = vector.load %arg6[%c0_16, %c0_17] : memref<8x128xf32, #tpu.memory_space<vmem>>, vector<8x128xf32>
    tpu.vector_store %arg6[%c0_16, %c0_17], %34 {strides = array<i32>} : memref<8x128xf32, #tpu.memory_space<vmem>>, vector<8x128xf32>,
    return
  }
  func.func @transform_0(%arg0: i32) -> (i32, i32) {
    %c0_i32 = arith.constant 0 : i32
    %c0_i32_0 = arith.constant 0 : i32
    %c0_i32_1 = arith.constant 0 : i32
    return %c0_i32, %c0_i32_0 : i32, i32
  }
  func.func @transform_1(%arg0: i32) -> (i32, i32) {
    %c0_i32 = arith.constant 0 : i32
    %c0_i32_0 = arith.constant 0 : i32
    return %c0_i32, %arg0 : i32, i32
  }
  func.func @transform_2(%arg0: i32) -> (i32, i32) {
    %c0_i32 = arith.constant 0 : i32
    %c0_i32_0 = arith.constant 0 : i32
    return %c0_i32, %arg0 : i32, i32
  }
  func.func @transform_3(%arg0: i32) -> (i32, i32) {
    %c0_i32 = arith.constant 0 : i32
    %c0_i32_0 = arith.constant 0 : i32
    return %c0_i32, %arg0 : i32, i32
  }
  func.func @transform_4(%arg0: i32) -> (i32, i32) {
    %c0_i32 = arith.constant 0 : i32
    %c0_i32_0 = arith.constant 0 : i32
    return %c0_i32, %arg0 : i32, i32
  }
  func.func @transform_5(%arg0: i32) -> (i32, i32) {
    %c0_i32 = arith.constant 0 : i32
    %c0_i32_0 = arith.constant 0 : i32
    return %c0_i32, %arg0 : i32, i32
  }
}

</mosaic_0001>

<bundles_post_ra>
// kernel: tpu_custom_call.1
= control target key start
LH: loop header
LB: loop body
LE: loop exit
PB: predicated region body
PF: predicated region fallthrough
CT: control target
= control target key end

     0   :  { %s1293_s0 = inlined_call_operand.hbm [shape: bf16[8,256], index: 0, kind: input, shape index: {}]   ;;  %s1294_s1 = inlined_call_operand.hbm [shape: f32[8,256], index: 1, kind: input, shape index: {}]   ;;  %s1295_s2 = inlined_call_operand.hbm [shape: bf16[256,256], index: 2, kind: input, shape index: {}]   ;;  %s1296_s3 = inlined_call_operand.vmem [shape: f32[1,256], index: 3, kind: input, shape index: {}]   ;;  %s1297_s4 = inlined_call_operand.vmem [shape: f32[1,256], index: 4, kind: input, shape index: {}]   ;;  %s1298_s5 = inlined_call_operand.hbm [shape: f32[8,256], index: 5, kind: output, shape index: {}]  }
   0x1   :  { %1303 = sst [smem:[#allocation12_spill]] %s1294_s1 }
   0x2   :  { %1304 = sst [smem:[#allocation13_spill]] %s1295_s2 }
   0x3   :  { %10 = vsyncpa [#allocation3], 0 }
   0x4   :  { %11 = vsyncpa [#allocation6], 0 }
   0x5   :  { %13 = vsyncpa [#allocation6 + $0x1], 0 }
   0x6   :  { %14 = vsyncpa [#allocation4], 0 }
   0x7   :  { %16 = vsyncpa [#allocation4 + $0x1], 0  ;;  %s1020_s18 = smov 0   ;;  %s1022_s19 = smov 0  }
   0x8   :  { %s1024_s20 = smov 0   ;;  %s1026_s21 = smov 0  }
   0x9 LB: > { %s1041_s22 = sadd.s32 1, %s981_s21   ;;  %s50_s23 = sadd.s32 1, %s977_s20  ;;  %s981_s21 = sphi %s1026_s21, %s1323_s21   ;;  %s977_s20 = sphi %s1024_s20, %s1322_s20   ;;  %s973_s19 = sphi %s1022_s19, %s1321_s19   ;;  %s969_s18 = sphi %s1020_s18, %s1320_s18  }
   0xa   : > { %s47_s24 = ssub.s32 %s981_s21, %s1041_s22  ;;  %p57_p0 = scmp.ne.s32.totalorder %s977_s20, %s973_s19 }
   0xb   : > { %p48_p1 = scmp.eq.s32.totalorder %s47_s24, 0  ;;  %p58_p2 = scmp.eq.s32.totalorder %s981_s21, 0 }
   0xc   : > { %p760_p4 = scmp.lt.s32.totalorder %s981_s21, 2  ;;  %s202_s26 = sand.u32 1, %s981_s21  }
   0xd   : > { %s1052_s25 = scalar_select %p48_p1, %s977_s20, %s50_s23  }
   0xe   : > { %p59_p5 = por %p58_p2, %p57_p0  ;;  %s204_s27 = sand.u32 1, %s977_s20  }
   0xf   : > { %s680_s28 = sshll.u32 %s204_s27, 3  ;;  %s681_s29 = sshll.u32 %s981_s21, 7 }
  0x10   : > { %s1305_s1 = sld [smem:[#allocation12_spill]]  ;;  %s206_s8 = scalar_lea.vmem [#allocation5], %s680_s28 }
  0x11   : > { %s213_s9 = sshll.u32 %s206_s8, 4  ;;  %p1065_p6 = pnand %p760_p4, %p59_p5  ;;  %s1069_s9 = int_to_ptr.vmem [resolvable:$true] %s213_s9 }
  0x12   : > { %s1071_s11 = sshll.u32 %s204_s27, 7  ;;  %s1073_s12 = scalar_lea.sflag [#allocation6], %s202_s26 }
  0x13   : > { %p825_p8 = pneg %p1065_p6 }
  0x16   : > { %s1063_s7 = scalar_lea.hbm %s1305_s1, %s681_s29  ;;  %s828_s16 = scalar_lea.hbm %s1305_s1, 256 }
  0x17   : > { %s823_s13 = scalar_lea.hbm %s1063_s7, 128  ;;  %p829_p11 = scmp.lt.u32.totalorder %s1063_s7, %s1305_s1 }
  0x18   : > { %p824_p7 = scmp.ne.s32.totalorder %s1063_s7, %s823_s13  ;;  %p830_p12 = scmp.lt.u32.totalorder %s828_s16, %s823_s13 }
  0x19   : > { %p832_p1 = scmp.lt.u32.totalorder %s823_s13, %s1063_s7 }
  0x1a   : > { %p826_p9 = pnand %p825_p8, %p824_p7  ;;  %p831_p13 = por %p830_p12, %p829_p11 }
  0x1c   : > { %p827_p10 = pneg %p826_p9  ;;  %p833_p2 = por %p832_p1, %p831_p13 }
  0x1e   : > { %p834_p4 = pnand %p833_p2, %p827_p10 }
  0x20   : > { %837 = shalt.err (!%p834_p4)
}
  0x21   : > { %s838_s24 = scalar_lea.vmem %s1069_s9, 128  ;;  %s983_s26 = smov [#allocation5]  }
  0x22   : > { %p839_p5 = scmp.ne.s32.totalorder %s1069_s9, %s838_s24  ;;  %s843_s27 = sshll.u32 %s983_s26, 4  ;;  %s844_s27 = int_to_ptr.vmem [resolvable:$false] %s843_s27 }
  0x23   : > { %s845_s28 = scalar_lea.vmem %s844_s27, 256  ;;  %p846_p3 = scmp.lt.s32.totalorder %s1069_s9, %s844_s27 }
  0x24   : > { %p841_p7 = pnand %p839_p5, %p825_p8  ;;  %p847_p11 = scmp.lt.s32.totalorder %s845_s28, %s838_s24 }
  0x26   : > { %p842_p9 = pneg %p841_p7  ;;  %p848_p12 = por %p847_p11, %p846_p3 }
  0x28   : > { %p849_p13 = pnand %p848_p12, %p842_p9 }
  0x2a   : > { %852 = shalt.err (!%p849_p13)
}
  0x2b   : > { %751 = dma.hbm_to_vmem [thread:$0]  (!%p1065_p6), %s1063_s7, 128, %s1069_s9, %s1073_s12  }
  0x2c   : > { %s224_s29 = scalar_lea.vmem [#allocation7], %s1071_s11  ;;  %s1103_s6 = sadd.s32 4294967295, %s981_s21  }
  0x2d   : > { %s230_s30 = sshll.u32 %s224_s29, 4  ;;  %s676_s8 = sadd.s32 4294967294, %s981_s21   ;;  %s1130_s30 = int_to_ptr.vmem [resolvable:$true] %s230_s30 }
  0x2e   : > { %p63_p3 = scmp.ne.s32.totalorder %s973_s19, %s969_s18  ;;  %p1299_p10 = scmp.eq.s32.totalorder %s1103_s6, 0 }
  0x2f   : > { %p165_p1 = scmp.eq.s32.totalorder %s1103_s6, 1  ;;  %p171_p2 = scmp.eq.s32.totalorder %s676_s8, 1 }
  0x30   : > { %p1112_p4 = por %p1299_p10, %p63_p3  ;;  %p677_p5 = scmp.ge.s32.totalorder %s981_s21, 1 }
  0x31   : > { %p1120_p7 = por %p165_p1, %p57_p0  ;;  %p1124_p9 = por %p171_p2, %p63_p3 }
  0x32   : > { %s1307_s13 = scalar_select %p1112_p4, 1, 0 }
  0x33   : > { %s1308_s7 = scalar_select %p1120_p7, 1, 0 }
  0x34   : > { %s1309_s9 = scalar_select %p1124_p9, 1, 0 }
  0x35   : > { %p178_p11 = scmp.lt.s32.totalorder %s981_s21, 3  ;;  %s683_s11 = sshll.u32 %s981_s21, 6 }
  0x36   : > { %s984_s15 = smov [#allocation2]   ;;  %s1311_s2 = sld [smem:[#allocation13_spill]] }
  0x37   : > { %p1132_p12 = pnand %p677_p5, %p178_p11  ;;  %s191_s16 = sshll.u32 %s984_s15, 4  ;;  %s1143_s16 = int_to_ptr.vmem [resolvable:$true] %s191_s16 }
  0x39   : > { %s1310_s14 = scalar_select %p1132_p12, 1, 0 }
  0x3a   : > { %p744_p0 = pneg %p1132_p12 }
  0x3c   : > { %s1139_s24 = scalar_lea.hbm %s1311_s2, %s683_s11  ;;  %p1147_p13 = pnand %p744_p0, %p1299_p10 }
  0x3d   : > { %s853_s27 = scalar_lea.hbm %s1139_s24, 2048  ;;  %s858_s8 = scalar_lea.hbm %s1311_s2, 4096 }
  0x3e   : > { %p854_p3 = scmp.ne.s32.totalorder %s1139_s24, %s853_s27  ;;  %p859_p5 = scmp.lt.u32.totalorder %s1139_s24, %s1311_s2 }
  0x3f   : > { %p860_p11 = scmp.lt.u32.totalorder %s858_s8, %s853_s27  ;;  %p862_p0 = scmp.lt.u32.totalorder %s853_s27, %s1139_s24 }
  0x40   : > { %p856_p1 = pnand %p854_p3, %p825_p8 }
  0x41   : > { %p861_p9 = por %p860_p11, %p859_p5 }
  0x42   : > { %p857_p2 = pneg %p856_p1 }
  0x43   : > { %p863_p10 = por %p862_p0, %p861_p9 }
  0x45   : > { %p864_p7 = pnand %p863_p10, %p857_p2 }
  0x47   : > { %867 = shalt.err (!%p864_p7)
}
  0x48   : > { %s868_s17 = scalar_lea.vmem %s1130_s30, 2048  ;;  %s985_s23 = smov [#allocation7]  }
  0x49   : > { %p869_p3 = scmp.ne.s32.totalorder %s1130_s30, %s868_s17  ;;  %s873_s28 = sshll.u32 %s985_s23, 4  ;;  %s874_s28 = int_to_ptr.vmem [resolvable:$false] %s873_s28 }
  0x4a   : > { %s875_s29 = scalar_lea.vmem %s874_s28, 4096  ;;  %p876_p12 = scmp.lt.s32.totalorder %s1130_s30, %s874_s28 }
  0x4b   : > { %p871_p1 = pnand %p869_p3, %p825_p8  ;;  %p877_p5 = scmp.lt.s32.totalorder %s875_s29, %s868_s17 }
  0x4d   : > { %p872_p4 = pneg %p871_p1  ;;  %p878_p11 = por %p877_p5, %p876_p12 }
  0x4f   : > { %p879_p9 = pnand %p878_p11, %p872_p4 }
  0x51   : > { %882 = shalt.err (!%p879_p9)
}
  0x52   : > { %s986_s27 = smov 128   ;;  %s987_s8 = smov 64  }
  0x53   : > { %s988_s11 = smov 4   ;;  %s883_s23 = scalar_lea.hbm %s1293_s0, 128 }
  0x54   : > { %754 = dma.hbm_to_vmem [thread:$0]  (!%p1065_p6), %s1139_s24, 2048, %s1130_s30, %s1073_s12, %s986_s27, %s987_s8, %s988_s11  }
  0x55   : > { %p884_p8 = scmp.ne.s32.totalorder %s1293_s0, %s883_s23  ;;  %p885_p10 = pneg %p1147_p13 }
  0x56   : > { %p890_p12 = scmp.lt.u32.totalorder %s883_s23, %s1293_s0 }
  0x57   : > { %p886_p4 = pnand %p885_p10, %p884_p8 }
  0x59   : > { %p887_p7 = pneg %p886_p4 }
  0x5b   : > { %p892_p2 = pnand %p890_p12, %p887_p7 }
  0x5d   : > { %895 = shalt.err (!%p892_p2)
}
  0x5e   : > { %s896_s10 = scalar_lea.vmem %s1143_s16, 128  ;;  %p904_p1 = scmp.lt.s32.totalorder %s1143_s16, %s1143_s16 }
  0x5f   : > { %p897_p6 = scmp.ne.s32.totalorder %s1143_s16, %s896_s10  ;;  %p905_p5 = scmp.lt.s32.totalorder %s896_s10, %s896_s10 }
  0x61   : > { %p899_p0 = pnand %p897_p6, %p885_p10  ;;  %p906_p11 = por %p905_p5, %p904_p1 }
  0x63   : > { %p900_p3 = pneg %p899_p0 }
  0x65   : > { %p907_p9 = pnand %p906_p11, %p900_p3 }
  0x67   : > { %910 = shalt.err (!%p907_p9)
}
  0x68   : > { %747 = dma.hbm_to_vmem [thread:$0]  (!%p1147_p13), %s1293_s0, 128, %s1143_s16, [#allocation3]  }
  0x69   : > { %p1313_p8 = scmp.ne.s32.totalorder %s1310_s14, 0 }
  0x6a   : > { %p1314_p4 = scmp.eq.s32.totalorder (!%p1313_p8), %s1103_s6, 0 }
  0x6b   : > { %254 = sbr.rel (%p1313_p8) target bundleno = 455 (0x1c7), region = 40 }
  0x72   : > { %956 = dma.done.wait (%p1314_p4), [#allocation3], 128   ;;  %p1315_p10 = pmov %p1314_p4 }
  0x73   : > { %s260_s12 = sand.u32 1, %s1103_s6   ;;  %s1204_s30 = sand.u32 1, %s973_s19  }
  0x74   : > { %958 = vsyncadd (%p1315_p10), [#allocation3], 4294967168  ;;  %s686_s24 = sshll.u32 %s1204_s30, 3  ;;  %s261_s26 = scalar_lea.sflag [#allocation6], %s260_s12 }
  0x75   : > { %s1209_s16 = scalar_lea.vmem [#allocation5], %s686_s24  ;;  %p1316_p13 = scmp.ne.s32.totalorder %s1307_s13, 0 }
  0x77   : > { %960 = dma.done.wait (%p1316_p13), %s261_s26, 2176  }
  0x78   : > { %962 = vsyncadd (%p1316_p13), %s261_s26, 4294965120  ;;  %s687_s14 = sshll.u32 %s1204_s30, 7  ;;  %v318_v11 = vld [vmem:[#allocation2] sm:$0xff]  ;;  %p311_p7 = scmp.lt.s32.totalorder %s1103_s6, 1  ;;  %v520_v43 = vlaneseq  ;;  %v539_v59 = vld [vmem:[%s1209_s16] sm:$0xff] }
  0x79   : > { %s1216_s27 = scalar_lea.vmem [#allocation7], %s687_s14  ;;  %v690_v12 = vcombine.high %v318_v11, %v318_v11  ;;  %v689_v18 = vcombine.low %v318_v11, %v318_v11  ;;  %s709_s29 = sshll.u32 %s1103_s6, 7 }
  0x7a   : > { %v799_v0 = vld [vmem:[%s1216_s27 + $0x40] sm:$0xff]   ;;  %v801_v2 = vld [vmem:[%s1216_s27 + $0x48] sm:$0xff]   ;;  %v803_v4 = vld [vmem:[%s1216_s27 + $0x50] sm:$0xff]   ;;  %s312_s13 = scalar_select %p311_p7, %s1103_s6, 1  ;;  %v521_v44 = vshrl.u32 %v520_v43, 7 }
  0x7b   : > { %v800_v1 = vld [vmem:[%s1216_s27] sm:$0xff]   ;;  %712 = vmatprep.subr.bf16.mxu0 %v799_v0  ;;  %v802_v3 = vld [vmem:[%s1216_s27 + $0x8] sm:$0xff]   ;;  %v804_v5 = vld [vmem:[%s1216_s27 + $0x10] sm:$0xff]   ;;  %486 = vmatprep.mubr.bf16.mxu0 %v690_v12  ;;  %s310_s10 = scalar_lea.vmem [#allocation8], %s686_s24  ;;  %s1249_s26 = scalar_lea.hbm %s1298_s5, %s709_s29 }
  0x7c   : > { %713 = vmatpush3.bf16.msra.mxu0 %v800_v1  ;;  %v805_v6 = vld [vmem:[%s1216_s27 + $0x58] sm:$0xff]   ;;  %v807_v8 = vld [vmem:[%s1216_s27 + $0x60] sm:$0xff]   ;;  %v809_v10 = vld [vmem:[%s1216_s27 + $0x68] sm:$0xff]   ;;  %s313_s15 = scalar_lea.vmem %s1296_s3, %s312_s13  ;;  %s316_s17 = scalar_lea.vmem %s1297_s4, %s312_s13  ;;  %v522_v46 = vsub.s32 0, %v521_v44 }
  0x7d   : > { %714 = vmatprep.subr.bf16.mxu0 %v801_v2  ;;  %v806_v7 = vld [vmem:[%s1216_s27 + $0x18] sm:$0xff]   ;;  %v808_v9 = vld [vmem:[%s1216_s27 + $0x20] sm:$0xff]   ;;  %v810_v13 = vld [vmem:[%s1216_s27 + $0x28] sm:$0xff]   ;;  %s556_s1 = sshll.u32 %s310_s10, 4  ;;  %s543_s14 = scalar_lea.sflag [#allocation4], %s1204_s30  ;;  %s1251_s1 = int_to_ptr.vmem [resolvable:$true] %s556_s1 }
  0x7e   : > { %v811_v14 = vld [vmem:[%s1216_s27 + $0x70] sm:$0xff]   ;;  %v813_v16 = vld [vmem:[%s1216_s27 + $0x78] sm:$0xff]   ;;  %v512_v45 = vld [vmem:[%s313_s15] sm:$0x1]  ;;  %p1317_p2 = scmp.ne.s32.totalorder %s1308_s7, 0  ;;  %s989_s6 = smov [#allocation8]  }
  0x7f   : > { %v812_v15 = vld [vmem:[%s1216_s27 + $0x30] sm:$0xff]   ;;  %v814_v17 = vld [vmem:[%s1216_s27 + $0x38] sm:$0xff]   ;;  %v516_v49 = vld [vmem:[%s316_s17] sm:$0x1]  ;;  %s911_s27 = scalar_lea.vmem %s1251_s1, 128  ;;  %s915_s24 = sshll.u32 %s989_s6, 4  ;;  %s916_s24 = int_to_ptr.vmem [resolvable:$false] %s915_s24 }
  0x80   : > { %715 = vmatpush3.bf16.msra.mxu0 %v802_v3  ;;  %p912_p12 = scmp.ne.s32.totalorder %s1251_s1, %s911_s27  ;;  %s917_s16 = scalar_lea.vmem %s916_s24, 256 }
  0x81   : > { %716 = vmatprep.subr.bf16.mxu0 %v803_v4  ;;  %p918_p3 = scmp.lt.s32.totalorder %s1251_s1, %s916_s24  ;;  %p919_p1 = scmp.lt.s32.totalorder %s917_s16, %s911_s27 }
  0x82   : > { %p913_p6 = pnand %p912_p12, %p1317_p2 }
  0x83   : > { %p920_p5 = por %p919_p1, %p918_p3 }
  0x84   : > { %717 = vmatpush3.bf16.msra.mxu0 %v804_v5  ;;  %p914_p0 = pneg %p913_p6 }
  0x85   : > { %718 = vmatprep.subr.bf16.mxu0 %v805_v6 }
  0x86   : > { %p921_p11 = pnand %p920_p5, %p914_p0 }
  0x88   : > { %719 = vmatpush3.bf16.msra.mxu0 %v806_v7 }
  0x89   : > { %720 = vmatprep.subr.bf16.mxu0 %v807_v8 }
  0x8c   : > { %721 = vmatpush3.bf16.msra.mxu0 %v808_v9 }
  0x8d   : > { %722 = vmatprep.subr.bf16.mxu0 %v809_v10 }
  0x90   : > { %723 = vmatpush3.bf16.msra.mxu0 %v810_v13 }
  0x91   : > { %724 = vmatprep.subr.bf16.mxu0 %v811_v14 }
  0x94   : > { %725 = vmatpush3.bf16.msra.mxu0 %v812_v15 }
  0x95   : > { %726 = vmatprep.subr.bf16.mxu0 %v813_v16 }
  0x98   : > { %727 = vmatpush3.bf16.msra.mxu0 %v814_v17 }
  0x9b   : > { %487 = vmatmul.mubr.bf16.vlgmr.msra.gmra.mrb[0].mxu0 %v689_v18 }
 0x16e   : > { %v728_v19 = vpop.f32.mrb[0].mxu0 }
 0x16f   : > { %v729_v20 = vpop.f32.mrb[1].mxu0 }
 0x170   : > { %v730_v21 = vadd.f32 %v729_v20, %v728_v19  ;;  %v731_v22 = vpop.f32.mrb[2].mxu0 }
 0x171   : > { %v732_v23 = vpop.f32.mrb[3].mxu0 }
 0x172   : > { %v494_v24 = vrot.slane %v730_v21, 4  ;;  %v501_v25 = vmul.f32 %v730_v21, %v730_v21 }
 0x174   : > { %v495_v26 = vadd.f32 %v730_v21, %v494_v24  ;;  %v502_v27 = vrot.slane %v501_v25, 4 }
 0x176   : > { %v496_v28 = vrot.slane %v495_v26, 2  ;;  %v503_v29 = vadd.f32 %v502_v27, %v501_v25 }
 0x178   : > { %v497_v30 = vadd.f32 %v496_v28, %v495_v26  ;;  %v504_v31 = vrot.slane %v503_v29, 2 }
 0x17a   : > { %v498_v32 = vrot.slane %v497_v30, 1  ;;  %v505_v33 = vadd.f32 %v504_v31, %v503_v29 }
 0x17c   : > { %v499_v34 = vadd.f32 %v498_v32, %v497_v30  ;;  %v506_v35 = vrot.slane %v505_v33, 1 }
 0x17e   : > { %v500_v36 = vmul.f32 0.125, %v499_v34  ;;  %v507_v37 = vadd.f32 %v506_v35, %v505_v33 }
 0x180   : > { %v508_v38 = vmul.f32 0.125, %v507_v37  ;;  %v509_v39 = vmul.f32 %v500_v36, %v500_v36 }
 0x182   : > { %v510_v40 = vsub.f32 %v508_v38, %v509_v39 }
 0x184   : > { %v511_v41 = vmax.f32 %v510_v40, 0.0 }
 0x186   : > { %v513_v42 = vadd.f32 1e-05, %v511_v41 }
 0x188   : > { %817 = vrsqrt.f32 %v513_v42 }
 0x192   : > { %v818_v47 = vpop.eup %817 }
 0x193   : > { %v515_v48 = vmul.f32 %v818_v47, %v512_v45 }
 0x195   : > { %v517_v50 = vmul.f32 %v515_v48, %v500_v36  ;;  %v523_v51 = vrot.slane %v515_v48, %v522_v46 }
 0x197   : > { %v518_v52 = vsub.f32 %v516_v49, %v517_v50  ;;  %v525_v53 = vmul.f32 %v730_v21, %v523_v51 }
 0x199   : > { %v530_v54 = vrot.slane %v518_v52, %v522_v46 }
 0x19b   : > { %v532_v55 = vadd.f32 %v530_v54, %v525_v53 }
 0x19d   : > { %v707_v56 = vmul.f32 -1.442695, %v532_v55 }
 0x19f   : > { %819 = vpow2.f32 %v707_v56 }
 0x1a9   : > { %v820_v57 = vpop.eup %819 }
 0x1aa   : > { %v536_v58 = vadd.f32 1.0, %v820_v57 }
 0x1ac   : > { %821 = vrcp.f32 %v536_v58 }
 0x1b6   : > { %v822_v60 = vpop.eup %821 }
 0x1b7   : > { %v540_v61 = vmul.f32 %v822_v60, %v539_v59 }
 0x1b9   : > { %541 = vst [vmem:[%s310_s10] sm:$0xff] %v540_v61 }
 0x1ba   : > { %924 = shalt.err (!%p921_p11)
}
 0x1bb   : > { %s925_s30 = scalar_lea.hbm %s1249_s26, 128  ;;  %s929_s11 = scalar_lea.hbm %s1298_s5, 256 }
 0x1bc   : > { %p926_p9 = scmp.ne.s32.totalorder %s1249_s26, %s925_s30  ;;  %p930_p10 = scmp.lt.u32.totalorder %s1249_s26, %s1298_s5 }
 0x1bd   : > { %p931_p13 = scmp.lt.u32.totalorder %s929_s11, %s925_s30  ;;  %p933_p12 = scmp.lt.u32.totalorder %s925_s30, %s1249_s26 }
 0x1be   : > { %p927_p8 = pnand %p926_p9, %p1317_p2 }
 0x1bf   : > { %p932_p7 = por %p931_p13, %p930_p10 }
 0x1c0   : > { %p928_p4 = pneg %p927_p8 }
 0x1c1   : > { %p934_p6 = por %p933_p12, %p932_p7 }
 0x1c3   : > { %p935_p0 = pnand %p934_p6, %p928_p4 }
 0x1c5   : > { %938 = shalt.err (!%p935_p0)
}
 0x1c6   : > { %742 = dma.vmem_to_hbm [thread:$0]  (%p1317_p2), %s1251_s1, 128, %s1249_s26, %s543_s14  }
 0x1c7 PF: > { %s568_s28 = sand.u32 1, %s969_s18   ;;  %p1318_p3 = scmp.ne.s32.totalorder %s1309_s9, 0 }
 0x1c8   : > { %p1319_p1 = scmp.ge.s32.totalorder %s981_s21, 2  ;;  %s569_s17 = scalar_lea.sflag [#allocation4], %s568_s28 }
 0x1ca   : > { %p756_p5 = pnand %p1319_p1, %p1318_p3 }
 0x1cc   : > { %964 = dma.done.wait (!%p756_p5), %s569_s17, 128  }
 0x1cd   : > { %966 = vsyncadd (!%p756_p5), %s569_s17, 4294967168  ;;  %p19_p11 = scmp.ge.s32.totalorder %s1041_s22, 4   ;;  %s1320_s18 = smov %s973_s19 }
 0x1ce   : > { %s1321_s19 = smov %s977_s20  ;;  %s1322_s20 = smov %s1052_s25 }
 0x1cf   : > { %s1323_s21 = smov %s1041_s22  ;;  %21 = sbr.rel (!%p19_p11) target bundleno = 9 (0x9), region = 107 }
 0x1d6   :  { %574 = vsyncpa [#allocation3], 1 }
 0x1d7   :  { %576 = vsyncpa [#allocation3 + $0x1], 1 }
 0x1d8   :  { %577 = vsyncpa [#allocation6], 1 }
 0x1d9   :  { %579 = vsyncpa [#allocation6 + $0x1], 1 }
 0x1da   :  { %580 = vsyncpa [#allocation4], 1 }
 0x1db   :  { %582 = vsyncpa [#allocation4 + $0x1], 1 }

</bundles_post_ra>
